<compile_context>
chip_gen: v5e
topology: v5e:2x2
jax: 0.10.0
libtpu: 0.0.40
codegen_flags: <defaults>
</compile_context>

<pallas_src>
import jax
import jax.numpy as jnp
from jax.experimental import pallas as pl
from jax.experimental.pallas import tpu as pltpu


_LANE_CANDIDATES = (4096, 2048, 1024, 512, 256, 128)
_TARGET_BLOCK_BYTES = 1 << 20  # ~1 MiB per input block (double-buffered by Pallas)


def _choose_lanes(total: int):
    """Largest lane width (multiple of 128) dividing `total`, preferring widths
    that leave >= 8 rows for sublane density.  None if 128 does not divide."""
    best = None
    for lanes in _LANE_CANDIDATES:
        if total % lanes == 0:
            if best is None:
                best = lanes
            if total // lanes >= 8:
                return lanes
    return best


def _row_tile(rows: int, lanes: int, itemsize: int) -> int:
    """Row tile: full extent if small, else a multiple of 8 sized so one block
    is ~_TARGET_BLOCK_BYTES (edge blocks are handled by Pallas masking)."""
    target = max(8, _TARGET_BLOCK_BYTES // (lanes * itemsize))
    if rows <= target:
        return rows
    return max(8, (target // 8) * 8)


# ----------------------------- kernels ------------------------------------ #

def _add_kernel(x_ref, o_ref, out_ref):
    # Single load-pair -> single store; keeps v5e's lone vst slot the limiter
    # only after DMA is hidden (kernel stays HBM-bound).
    out_ref[...] = x_ref[...] + o_ref[...]


def _concat_kernel(x_ref, o_ref, out_ref):
    # Source-select axis is the innermost grid axis; each step is one whole
    # unmasked block copy, placement is done by the output index_map.
    s = pl.program_id(2)

    @pl.when(s == 0)
    def _():
        out_ref[...] = x_ref[...]

    @pl.when(s == 1)
    def _():
        out_ref[...] = o_ref[...]


# ----------------------------- wrappers ------------------------------------ #

def _merge_add(x, orig, *, alias_x: bool = False):
    shape = x.shape
    total = x.size
    itemsize = jnp.dtype(x.dtype).itemsize

    lanes = _choose_lanes(total)
    padded = total
    if lanes is None:
        # Rare: element count not a multiple of 128 -> pad flat view (one copy).
        lanes = 1024
        padded = pl.cdiv(total, lanes) * lanes

    xf = x.reshape(-1)
    of = orig.reshape(-1)
    if padded != total:
        alias_x = False
        xf = jnp.pad(xf, (0, padded - total))
        of = jnp.pad(of, (0, padded - total))

    rows = padded // lanes
    x2 = xf.reshape(rows, lanes)
    o2 = of.reshape(rows, lanes)

    rt = _row_tile(rows, lanes, itemsize)
    spec = pl.BlockSpec((rt, lanes), lambda i: (i, 0))

    out = pl.pallas_call(
        _add_kernel,
        out_shape=jax.ShapeDtypeStruct((rows, lanes), x.dtype),
        grid_spec=pltpu.PrefetchScalarGridSpec(
            num_scalar_prefetch=0,
            grid=(pl.cdiv(rows, rt),),
            in_specs=[spec, spec],
            out_specs=spec,
        ),
        compiler_params=pltpu.CompilerParams(
            dimension_semantics=("parallel",)),
        # Optional in-place residual accumulation (only a win when the caller
        # donates x); off by default to keep x usable afterwards.
        input_output_aliases={0: 0} if alias_x else {},
    )(x2, o2)

    out = out.reshape(-1)
    if padded != total:
        out = out[:total]
    return out.reshape(shape)


def _merge_concat(x, orig):
    n, c, h, w = x.shape
    chw = c * h * w
    itemsize = jnp.dtype(x.dtype).itemsize

    lanes = _choose_lanes(chw)
    if lanes is not None:
        rows = chw // lanes
    else:
        # Fallback: keep (C, H*W); last dim not 128-aligned -> masked lane
        # stores (correct, just slower).
        rows, lanes = c, h * w

    x3 = x.reshape(n, rows, lanes)
    o3 = orig.reshape(n, rows, lanes)

    rt = _row_tile(rows, lanes, itemsize)
    grid = (n, pl.cdiv(rows, rt), 2)  # source-select axis last (fastest varying)

    in_spec = pl.BlockSpec((1, rt, lanes), lambda i, r, s: (i, r, 0))
    out_spec = pl.BlockSpec((1, rt, lanes), lambda i, r, s: (2 * i + s, r, 0))

    out = pl.pallas_call(
        _concat_kernel,
        out_shape=jax.ShapeDtypeStruct((2 * n, rows, lanes), x.dtype),
        grid_spec=pltpu.PrefetchScalarGridSpec(
            num_scalar_prefetch=0,
            grid=grid,
            in_specs=[in_spec, in_spec],
            out_specs=out_spec,
        ),
        compiler_params=pltpu.CompilerParams(
            dimension_semantics=("parallel", "parallel", "arbitrary")),
    )(x3, o3)

    # (2N, R, lanes) row-major == [x[0], orig[0], x[1], orig[1], ...] which is
    # exactly concat along dim=1 of NCHW.
    return out.reshape(n, 2 * c, h, w)


def merge_layer(x, orig, dense: bool = False, *, alias_x: bool = False):
    """Pallas implementation of MergeLayer.forward.

    x, orig: NCHW arrays of identical shape (N, C, H, W).
    Returns x + orig                  (dense=False) -> (N, C, H, W)
         or concat([x, orig], dim=1)  (dense=True)  -> (N, 2C, H, W)
    """
    assert x.shape == orig.shape and x.dtype == orig.dtype
    if dense:
        return _merge_concat(x, orig)
    return _merge_add(x, orig, alias_x=alias_x)


# ------------------------------- main -------------------------------------- #

if __name__ == "__main__":
    key = jax.random.PRNGKey(0)
    k1, k2 = jax.random.split(key)

    # Small NCHW shapes: batch=2, channels=4, spatial=16x16.
    x = jax.random.normal(k1, (2, 4, 16, 16), dtype=jnp.float32)
    orig = jax.random.normal(k2, (2, 4, 16, 16), dtype=jnp.float32)

    # dense=False : residual add
    out_add = merge_layer(x, orig, dense=False)
    jax.block_until_ready(out_add)
    assert out_add.shape == (2, 4, 16, 16)
    assert jnp.allclose(out_add, x + orig, atol=1e-6), "add mismatch"

    # dense=True : channel concat
    out_cat = merge_layer(x, orig, dense=True)
    jax.block_until_ready(out_cat)
    assert out_cat.shape == (2, 8, 16, 16)
    assert jnp.allclose(out_cat, jnp.concatenate([x, orig], axis=1),
                        atol=1e-6), "concat mismatch"

    print("KERNEL_OK")
</pallas_src>

<mosaic_0001>
module attributes {stable_mosaic.version = 11 : i64} {
  func.func @_add_kernel(%arg0: i32, %arg1: memref<8x256xf32, #tpu.memory_space<vmem>>, %arg2: memref<8x256xf32, #tpu.memory_space<vmem>>, %arg3: memref<8x256xf32, #tpu.memory_space<vmem>>) attributes {dimension_semantics = [#tpu.dimension_semantics<parallel>], iteration_bounds = array<i64: 1>, scalar_prefetch = 0 : i64, scratch_operands = 0 : i64, tpu.core_type = #tpu.core_type<tc>, window_params = [{transform_indices = @transform_0, window_bounds = array<i64: 8, 256>}, {transform_indices = @transform_1, window_bounds = array<i64: 8, 256>}, {transform_indices = @transform_2, window_bounds = array<i64: 8, 256>}]} {
    %c0 = arith.constant 0 : index
    %c0_0 = arith.constant 0 : index
    %0 = vector.load %arg1[%c0, %c0_0] : memref<8x256xf32, #tpu.memory_space<vmem>>, vector<8x256xf32>
    %c0_1 = arith.constant 0 : index
    %c0_2 = arith.constant 0 : index
    %1 = vector.load %arg2[%c0_1, %c0_2] : memref<8x256xf32, #tpu.memory_space<vmem>>, vector<8x256xf32>
    %2 = arith.addf %0, %1 : vector<8x256xf32>
    %c0_3 = arith.constant 0 : index
    %c0_4 = arith.constant 0 : index
    %3 = vector.load %arg3[%c0_3, %c0_4] : memref<8x256xf32, #tpu.memory_space<vmem>>, vector<8x256xf32>
    tpu.vector_store %arg3[%c0_3, %c0_4], %2 {strides = array<i32>} : memref<8x256xf32, #tpu.memory_space<vmem>>, vector<8x256xf32>,
    return
  }
  func.func @transform_0(%arg0: i32) -> (i32, i32) {
    %c0_i32 = arith.constant 0 : i32
    %c0_i32_0 = arith.constant 0 : i32
    return %arg0, %c0_i32 : i32, i32
  }
  func.func @transform_1(%arg0: i32) -> (i32, i32) {
    %c0_i32 = arith.constant 0 : i32
    %c0_i32_0 = arith.constant 0 : i32
    return %arg0, %c0_i32 : i32, i32
  }
  func.func @transform_2(%arg0: i32) -> (i32, i32) {
    %c0_i32 = arith.constant 0 : i32
    %c0_i32_0 = arith.constant 0 : i32
    return %arg0, %c0_i32 : i32, i32
  }
}

</mosaic_0001>

<bundles_post_ra>
// kernel: tpu_custom_call.1
= control target key start
LH: loop header
LB: loop body
LE: loop exit
PB: predicated region body
PF: predicated region fallthrough
CT: control target
= control target key end

     0   :  { %7 = vsyncpa [#allocation3], 0  ;;  %s174_s0 = inlined_call_operand.hbm [shape: f32[8,256], index: 0, kind: input, shape index: {}]   ;;  %s175_s1 = inlined_call_operand.hbm [shape: f32[8,256], index: 1, kind: input, shape index: {}]   ;;  %s176_s2 = inlined_call_operand.hbm [shape: f32[8,256], index: 2, kind: output, shape index: {}]  }
   0x1   :  { %8 = vsyncpa [#allocation6], 0 }
   0x2   :  { %9 = vsyncpa [#allocation4], 0  ;;  %s15_s11 = sshll.u32 %s174_s0, 4  ;;  %s147_s12 = smov [#allocation2]   ;;  %s16_s11 = int_to_ptr.hbm [resolvable:$true] %s15_s11 }
   0x3   :  { %s17_s13 = sshll.u32 %s147_s12, 4  ;;  %s26_s16 = sshll.u32 %s175_s1, 4  ;;  %s18_s13 = int_to_ptr.vmem [resolvable:$true] %s17_s13  ;;  %s27_s16 = int_to_ptr.hbm [resolvable:$true] %s26_s16 }
   0x4   :  { %20 = dma.hbm_to_vmem [thread:$0]  %s16_s11, 256, %s18_s13, [#allocation3]  }
   0x5   :  { %s148_s17 = smov [#allocation5]  }
   0x6   :  { %s28_s18 = sshll.u32 %s148_s17, 4  ;;  %s29_s18 = int_to_ptr.vmem [resolvable:$true] %s28_s18 }
   0x7   :  { %31 = dma.hbm_to_vmem [thread:$0]  %s27_s16, 256, %s29_s18, [#allocation6]  }
   0x8   :  { %141 = dma.done.wait [#allocation3], 256  }
   0x9   :  { %142 = vsyncadd [#allocation3], 4294967040 }
   0xa   :  { %143 = dma.done.wait [#allocation6], 256  }
   0xb   :  { %144 = vsyncadd [#allocation6], 4294967040  ;;  %s149_s19 = smov [#allocation7]   ;;  %s55_s22 = sshll.u32 %s176_s2, 4  ;;  %v40_v0 = vld [vmem:[#allocation2] sm:$0xff]  ;;  %v42_v1 = vld [vmem:[#allocation5] sm:$0xff]  ;;  %s56_s22 = int_to_ptr.hbm [resolvable:$true] %s55_s22 }
   0xc   :  { %s53_s0 = sshll.u32 %s149_s19, 4  ;;  %v41_v2 = vld [vmem:[#allocation2 + $0x8] sm:$0xff]  ;;  %v44_v3 = vadd.f32 %v42_v1, %v40_v0  ;;  %v43_v4 = vld [vmem:[#allocation5 + $0x8] sm:$0xff]  ;;  %s54_s0 = int_to_ptr.vmem [resolvable:$true] %s53_s0 }
   0xd   :  { %v45_v5 = vadd.f32 %v43_v4, %v41_v2 }
   0xe   :  { %46 = vst [vmem:[#allocation7] sm:$0xff] %v44_v3 }
   0xf   :  { %47 = vst [vmem:[#allocation7 + $0x8] sm:$0xff] %v45_v5 }
  0x10   :  { %58 = dma.vmem_to_hbm [thread:$0]  %s54_s0, 256, %s56_s22, [#allocation4]  }
  0x11   :  { %145 = dma.done.wait [#allocation4], 256  }
  0x12   :  { %146 = vsyncadd [#allocation4], 4294967040 }
  0x13   :  { %63 = vsyncpa [#allocation3], 1 }
  0x14   :  { %64 = vsyncpa [#allocation6], 1 }
  0x15   :  { %65 = vsyncpa [#allocation4], 1 }

</bundles_post_ra>
